<compile_context>
chip_gen: v7x
topology: tpu7x:2x2x1
jax: 0.10.0
libtpu: 0.0.40
codegen_flags: <defaults>
</compile_context>

<pallas_src>
import functools

import jax
import jax.numpy as jnp
from jax import lax
from jax.experimental import pallas as pl
from jax.experimental.pallas import tpu as pltpu


def _round_up(x, m):
    return (x + m - 1) // m * m


def _vmem_budget():
    """Return (per-block byte budget, vmem_limit_bytes) sized from chip VMEM."""
    try:
        vmem = pltpu.get_tpu_info().vmem_capacity_bytes
    except Exception:  # conservative fallback if the query is unavailable
        vmem = 64 * 1024 * 1024
    if vmem >= 128 * 1024 * 1024:                     # v5e / v6e (128 MiB)
        return 16 * 1024 * 1024, 64 * 1024 * 1024
    return 6 * 1024 * 1024, 32 * 1024 * 1024          # v7x (64 MiB per TC)


# ----------------------------- Pallas kernels --------------------------------
def _conv1(x_f32, w1_ref, b1_ref):
    """x_f32: (tg, K, C0) f32 tile -> conv1 output (tg*K, C1p) f32."""
    tg, k, c0 = x_f32.shape
    # Merge (tg, K) into the sublane axis while still f32 (layout-free), then
    # cast to the MXU operand dtype.
    a = x_f32.reshape(tg * k, c0).astype(jnp.bfloat16)
    return jnp.dot(a, w1_ref[...], preferred_element_type=jnp.float32) + b1_ref[...]


def _bn_relu(h, mean_ref, inv_ref):
    return jnp.maximum((h - mean_ref[...]) * inv_ref[...], 0.0)


def _write_stats(h, st_ref):
    """Per-tile (sum, sum-of-squares) partials for BatchNorm batch statistics."""
    s = jnp.sum(h, axis=0)[None, None, :]             # (1, 1, C)
    ss = jnp.sum(h * h, axis=0)[None, None, :]        # (1, 1, C)
    st_ref[...] = jnp.concatenate([s, ss], axis=1)    # (1, 2, C)


def _stats1_kernel(x_ref, w1_ref, b1_ref, st_ref):
    # 1x1 Conv2d == per-position linear layer over channels.
    h1 = _conv1(x_ref[...], w1_ref, b1_ref)
    _write_stats(h1, st_ref)


def _stats2_kernel(x_ref, w1_ref, b1_ref, m1_ref, i1_ref, w2_ref, b2_ref, st_ref):
    h1 = _conv1(x_ref[...], w1_ref, b1_ref)
    a1 = _bn_relu(h1, m1_ref, i1_ref).astype(jnp.bfloat16)
    h2 = jnp.dot(a1, w2_ref[...], preferred_element_type=jnp.float32) + b2_ref[...]
    _write_stats(h2, st_ref)


def _fused_kernel(x_ref, w1_ref, b1_ref, m1_ref, i1_ref, w2_ref, b2_ref,
                  m2_ref, i2_ref, w3_ref, b3_ref, o_ref, *, tg, K):
    h1 = _conv1(x_ref[...], w1_ref, b1_ref)
    a1 = _bn_relu(h1, m1_ref, i1_ref).astype(jnp.bfloat16)
    h2 = jnp.dot(a1, w2_ref[...], preferred_element_type=jnp.float32) + b2_ref[...]
    a2 = _bn_relu(h2, m2_ref, i2_ref).astype(jnp.bfloat16)
    y = jnp.dot(a2, w3_ref[...], preferred_element_type=jnp.float32)
    y = y.reshape(tg, K, -1)                          # f32 sublane split, layout-free
    # torch.max(point_features, dim=2)[0] fused into the conv tile; the conv3
    # bias commutes with the max over K, so it is added once afterwards.
    o_ref[...] = jnp.max(y, axis=1) + b3_ref[...]     # (tg, Cop)


# ------------------------------ host wrapper ---------------------------------
@jax.jit
def pointnet_pallas(regions, w1, b1, w2, b2, w3, b3):
    """regions: [B, M, K, C0] channel-last f32. Returns [B, C_out, M]."""
    B, M, K, C0 = regions.shape
    G = B * M
    C1 = w1.shape[1]
    C_out = w3.shape[1]

    # Lane-pad hidden/output channel dims; padded weight/bias entries are zero,
    # so padded channels are exactly zero through conv+BN+ReLU and drop out.
    C1p = _round_up(C1, 128)
    Cop = _round_up(C_out, 128)
    w1p = jnp.pad(w1, ((0, 0), (0, C1p - C1))).astype(jnp.bfloat16)
    w2p = jnp.pad(w2, ((0, C1p - C1), (0, C1p - C1))).astype(jnp.bfloat16)
    w3p = jnp.pad(w3, ((0, C1p - C1), (0, Cop - C_out))).astype(jnp.bfloat16)
    b1p = jnp.pad(b1, (0, C1p - C1))[None, :].astype(jnp.float32)
    b2p = jnp.pad(b2, (0, C1p - C1))[None, :].astype(jnp.float32)
    b3p = jnp.pad(b3, (0, Cop - C_out))[None, :].astype(jnp.float32)

    # --- G-row tile size from the per-chip VMEM budget ------------------------
    block_budget, vmem_limit = _vmem_budget()
    # Fixed: double-buffered bf16 weights + slack.  Per row: x tile (f32,
    # lane-padded to 128 in VMEM, double-buffered) + the fused pass's live
    # intermediates (h1/a1/h2/a2/y) + output rows.
    fixed = 4 * (C0 * C1p + C1p * C1p + C1p * Cop) + 64 * 1024
    per_row = K * (2 * 4 * 128 + 12 * C1p + 4 * Cop) + 8 * Cop
    tg = max(8, ((block_budget - fixed) // max(per_row, 1)) // 8 * 8)
    tg = min(tg, 1024)
    g8 = _round_up(G, 8)
    if g8 >= 16:                          # >=2 grid steps keeps both v7x TCs busy
        tg = min(tg, max(8, (g8 // 2) // 8 * 8))
    tg = min(tg, g8)
    G_pad = _round_up(G, tg)
    n_tiles = G_pad // tg
    n_pad = G_pad - G

    x = regions.reshape(G, K, C0).astype(jnp.float32)        # pure reshape, f32
    if n_pad:
        x = jnp.pad(x, ((0, n_pad), (0, 0), (0, 0)))         # zero rows

    row_spec = pl.BlockSpec((tg, K, C0), lambda i: (i, 0, 0))
    full2d = lambda r, c: pl.BlockSpec((r, c), lambda i: (0, 0))
    stats_spec = pl.BlockSpec((1, 2, C1p), lambda i: (i, 0, 0))
    stats_shape = jax.ShapeDtypeStruct((n_tiles, 2, C1p), jnp.float32)

    cparams = pltpu.CompilerParams(
        dimension_semantics=("parallel",),
        vmem_limit_bytes=vmem_limit)

    count = float(G * K)                  # real (unpadded) positions
    npk = float(n_pad * K)                # padded positions

    def finalize(partials, pad_val):
        # BatchNorm2d training-mode (biased) batch statistics from sum / sumsq,
        # with the analytically-known contribution of the zero-padded G rows
        # (constant `pad_val` per channel) removed on the host -- no per-tile mask.
        s = jnp.sum(partials, axis=0)                         # [2, Cp]
        total = s[0] - npk * pad_val
        total_sq = s[1] - npk * pad_val * pad_val
        mean = total / count
        var = jnp.maximum(total_sq / count - mean * mean, 0.0)
        inv = lax.rsqrt(var + 1e-5)
        return mean[None, :], inv[None, :]                    # (1, Cp) each

    # ---- pass 1: conv1 batch-stat partials only (no activation written) ------
    p1 = pl.pallas_call(
        _stats1_kernel,
        grid=(n_tiles,),
        in_specs=[row_spec, full2d(C0, C1p), full2d(1, C1p)],
        out_specs=stats_spec,
        out_shape=stats_shape,
        compiler_params=cparams,
        cost_estimate=pl.CostEstimate(
            flops=2 * G_pad * K * C0 * C1p, transcendentals=0,
            bytes_accessed=4 * G_pad * K * C0 + 8 * n_tiles * C1p),
    )(x, w1p, b1p)
    mean1, inv1 = finalize(p1, b1p[0])                        # zero rows -> conv1 = b1

    # ---- pass 2: recompute conv1+BN1+ReLU, conv2 batch-stat partials ---------
    p2 = pl.pallas_call(
        _stats2_kernel,
        grid=(n_tiles,),
        in_specs=[row_spec, full2d(C0, C1p), full2d(1, C1p),
                  full2d(1, C1p), full2d(1, C1p),
                  full2d(C1p, C1p), full2d(1, C1p)],
        out_specs=stats_spec,
        out_shape=stats_shape,
        compiler_params=cparams,
        cost_estimate=pl.CostEstimate(
            flops=2 * G_pad * K * (C0 + C1p) * C1p, transcendentals=0,
            bytes_accessed=4 * G_pad * K * C0 + 8 * n_tiles * C1p),
    )(x, w1p, b1p, mean1, inv1, w2p, b2p)
    # Padded rows produce conv2(ReLU(BN1(b1))) + b2 -- replicate that constant on
    # the host with the same dtypes / MXU path and remove it from the statistics.
    a_pad = jnp.maximum((b1p - mean1) * inv1, 0.0).astype(jnp.bfloat16)
    h2_pad = jnp.dot(a_pad, w2p, preferred_element_type=jnp.float32) + b2p
    mean2, inv2 = finalize(p2, h2_pad[0])

    # ---- pass 3: fused conv1->BN1->ReLU->conv2->BN2->ReLU->conv3->max(K) -----
    out = pl.pallas_call(
        functools.partial(_fused_kernel, tg=tg, K=K),
        grid=(n_tiles,),
        in_specs=[row_spec, full2d(C0, C1p), full2d(1, C1p),
                  full2d(1, C1p), full2d(1, C1p),
                  full2d(C1p, C1p), full2d(1, C1p),
                  full2d(1, C1p), full2d(1, C1p),
                  full2d(C1p, Cop), full2d(1, Cop)],
        out_specs=pl.BlockSpec((tg, Cop), lambda i: (i, 0)),
        out_shape=jax.ShapeDtypeStruct((G_pad, Cop), jnp.float32),
        compiler_params=cparams,
        cost_estimate=pl.CostEstimate(
            flops=2 * G_pad * K * (C0 * C1p + C1p * C1p + C1p * Cop),
            transcendentals=0,
            bytes_accessed=4 * G_pad * K * C0 + 4 * G_pad * Cop),
    )(x, w1p, b1p, mean1, inv1, w2p, b2p, mean2, inv2, w3p, b3p)

    out = out[:G, :C_out]                                     # drop G/channel padding
    # The small [B,M,C_out]->[B,C_out,M] transpose is left to XLA (G*C_out bytes
    # are negligible next to the fused passes; a kernel-side transposed store
    # would force tg to be a multiple of 128).
    return out.reshape(B, M, C_out).transpose(0, 2, 1)        # [B, C_out, M]


# ----------------------- plain-JAX glue (sample / group) ---------------------
# TODO(synk): `sample` / `group` are external (torch_geometric-style) functions
# not defined in the module; implemented here as deterministic farthest-point
# sampling (ratio 1/4) and radius ball-query grouping with relative coordinates.
def farthest_point_sample(pts, m):
    """pts: [N, 3] -> indices [m], deterministic (starts at index 0)."""
    n = pts.shape[0]

    def body(i, carry):
        idx, mind = carry
        last = pts[idx[i - 1]]
        d = jnp.sum((pts - last[None, :]) ** 2, axis=-1)
        mind = jnp.minimum(mind, d)
        nxt = jnp.argmax(mind).astype(jnp.int32)
        return idx.at[i].set(nxt), mind

    idx0 = jnp.zeros((m,), jnp.int32)
    mind0 = jnp.full((n,), jnp.inf, jnp.float32)
    idx, _ = jax.lax.fori_loop(1, m, body, (idx0, mind0))
    return idx


def ball_query_group(centroids, pts, feats, radius, k):
    """centroids [M,3], pts [N,3], feats [N,C] -> regions [M, k, 3+C]."""
    n = pts.shape[0]
    d2 = jnp.sum((centroids[:, None, :] - pts[None, :, :]) ** 2, axis=-1)  # [M,N]
    within = d2 <= radius * radius
    cand = jnp.where(within, jnp.arange(n, dtype=jnp.int32)[None, :], n)
    cand = jnp.sort(cand, axis=1)[:, :k]                     # first k in-ball idx
    first = cand[:, :1]
    cand = jnp.where(cand == n, first, cand)                 # pad short groups
    grouped_pts = pts[cand]                                   # [M, k, 3]
    grouped_feats = feats[cand]                               # [M, k, C]
    rel = grouped_pts - centroids[:, None, :]
    return jnp.concatenate([rel, grouped_feats], axis=-1)


def ssg_set_abstraction_forward(points, point_features, params, ball_query_radius,
                                max_group_size):
    """points: [B, 3, N], point_features: [B, C_in, N]
       -> centroids [B, 3, N/4], centroid_features [B, C_out, N/4]."""
    B, _, N = points.shape
    M = N // 4

    pts_bn3 = jnp.transpose(points, (0, 2, 1))                # [B, N, 3]
    feats_bnc = jnp.transpose(point_features, (0, 2, 1))      # [B, N, C_in]

    centroid_rows, region_list = [], []
    for b in range(B):
        idx = farthest_point_sample(pts_bn3[b], M)
        cent = pts_bn3[b][idx]                                # [M, 3]
        centroid_rows.append(cent)
        region_list.append(
            ball_query_group(cent, pts_bn3[b], feats_bnc[b],
                             ball_query_radius, max_group_size))
    centroids_flat = jnp.concatenate(centroid_rows, axis=0)   # [B*M, 3]
    regions = jnp.stack(region_list, axis=0)                  # [B, M, K, 3+C_in]

    centroid_features = pointnet_pallas(regions, *params)     # [B, C_out, M]
    # Mirrors the original `centroids.view(batch_size, 3, -1)` -- a raw reshape
    # of the contiguous [B*M, 3] buffer, NOT a transpose.
    centroids_out = centroids_flat.reshape(B, 3, M)
    return centroids_out, centroid_features


# ------------------------------- parameter init -------------------------------
def xavier_uniform(key, fan_in, fan_out):
    # Matmul weight [fan_in, fan_out] == transposed 1x1 Conv2d weight
    # [fan_out, fan_in, 1, 1]; same xavier_uniform_ bound.
    bound = (6.0 / (fan_in + fan_out)) ** 0.5
    return jax.random.uniform(key, (fan_in, fan_out), jnp.float32, -bound, bound)


def init_params(key, input_channels, output_channels):
    c0 = input_channels + 3
    kw1, kw2, kw3 = jax.random.split(key, 3)
    w1 = xavier_uniform(kw1, c0, input_channels)
    w2 = xavier_uniform(kw2, input_channels, input_channels)
    w3 = xavier_uniform(kw3, input_channels, output_channels)
    b1 = jnp.zeros((input_channels,), jnp.float32)
    b2 = jnp.zeros((input_channels,), jnp.float32)
    b3 = jnp.zeros((output_channels,), jnp.float32)
    return (w1, b1, w2, b2, w3, b3)


# ------------------------------------ main -------------------------------------
if __name__ == "__main__":
    B, N, C_in, C_out = 2, 16, 4, 8
    ball_query_radius = 0.4
    max_group_size = 8

    key = jax.random.PRNGKey(0)
    k_pts, k_feat, k_param = jax.random.split(key, 3)
    points = jax.random.uniform(k_pts, (B, 3, N), jnp.float32)             # [B,3,N]
    point_features = jax.random.normal(k_feat, (B, C_in, N), jnp.float32)  # [B,C,N]
    params = init_params(k_param, C_in, C_out)

    centroids, centroid_features = ssg_set_abstraction_forward(
        points, point_features, params, ball_query_radius, max_group_size)
    (centroids, centroid_features) = jax.block_until_ready(
        (centroids, centroid_features))

    assert centroids.shape == (B, 3, N // 4), centroids.shape
    assert centroid_features.shape == (B, C_out, N // 4), centroid_features.shape
    assert jnp.all(jnp.isfinite(centroid_features))
    print("KERNEL_OK")
</pallas_src>

<mosaic_0001>
module attributes {stable_mosaic.version = 11 : i64} {
  func.func @_stats1_kernel(%arg0: i32, %arg1: memref<8x8x7xf32, #tpu.memory_space<vmem>>, %arg2: memref<7x128xbf16, #tpu.memory_space<vmem>>, %arg3: memref<1x128xf32, #tpu.memory_space<vmem>>, %arg4: memref<1x2x128xf32, #tpu.memory_space<vmem>>) attributes {dimension_semantics = [#tpu.dimension_semantics<parallel>], iteration_bounds = array<i64: 1>, scalar_prefetch = 0 : i64, scratch_operands = 0 : i64, tpu.core_type = #tpu.core_type<tc>, window_params = [{transform_indices = @transform_0, window_bounds = array<i64: 8, 8, 7>}, {pipeline_mode = #tpu.pipeline_mode<synchronous>, transform_indices = @transform_1, window_bounds = array<i64: 7, 128>}, {pipeline_mode = #tpu.pipeline_mode<synchronous>, transform_indices = @transform_2, window_bounds = array<i64: 1, 128>}, {transform_indices = @transform_3, window_bounds = array<i64: 1, 2, 128>}]} {
    %c0 = arith.constant 0 : index
    %c0_0 = arith.constant 0 : index
    %c0_1 = arith.constant 0 : index
    %0 = vector.load %arg1[%c0, %c0_0, %c0_1] : memref<8x8x7xf32, #tpu.memory_space<vmem>>, vector<8x8x7xf32>
    %1 = vector.shape_cast %0 : vector<8x8x7xf32> to vector<64x7xf32>
    %2 = arith.truncf %1 : vector<64x7xf32> to vector<64x7xbf16>
    %c0_2 = arith.constant 0 : index
    %c0_3 = arith.constant 0 : index
    %3 = vector.load %arg2[%c0_2, %c0_3] : memref<7x128xbf16, #tpu.memory_space<vmem>>, vector<7x128xbf16>
    %cst = arith.constant dense<0.000000e+00> : vector<64x128xf32>
    %4 = tpu.matmul %2, %3, %cst {dimension_numbers = #tpu.dot_dimension_numbers<[1], [0], [0], [1], [0, 0, 1, 1], [], []>} : vector<64x7xbf16>, vector<7x128xbf16>, vector<64x128xf32> -> vector<64x128xf32>
    %c0_4 = arith.constant 0 : index
    %c0_5 = arith.constant 0 : index
    %5 = vector.load %arg3[%c0_4, %c0_5] : memref<1x128xf32, #tpu.memory_space<vmem>>, vector<1x128xf32>
    %6 = vector.broadcast %5 : vector<1x128xf32> to vector<64x128xf32>
    %7 = arith.addf %4, %6 : vector<64x128xf32>
    %cst_6 = arith.constant dense<0.000000e+00> : vector<128xf32>
    %8 = vector.multi_reduction <add>, %7, %cst_6 [0] : vector<64x128xf32> to vector<128xf32>
    %9 = vector.shape_cast %8 : vector<128xf32> to vector<1x1x128xf32>
    %10 = arith.mulf %7, %7 : vector<64x128xf32>
    %cst_7 = arith.constant dense<0.000000e+00> : vector<128xf32>
    %11 = vector.multi_reduction <add>, %10, %cst_7 [0] : vector<64x128xf32> to vector<128xf32>
    %12 = vector.shape_cast %11 : vector<128xf32> to vector<1x1x128xf32>
    %13 = tpu.concatenate %9, %12 in 1 : vector<1x1x128xf32>, vector<1x1x128xf32> -> vector<1x2x128xf32>
    %c0_8 = arith.constant 0 : index
    %c0_9 = arith.constant 0 : index
    %c0_10 = arith.constant 0 : index
    %14 = vector.load %arg4[%c0_8, %c0_9, %c0_10] : memref<1x2x128xf32, #tpu.memory_space<vmem>>, vector<1x2x128xf32>
    tpu.vector_store %arg4[%c0_8, %c0_9, %c0_10], %13 {strides = array<i32>} : memref<1x2x128xf32, #tpu.memory_space<vmem>>, vector<1x2x128xf32>,
    return
  }
  func.func @transform_0(%arg0: i32) -> (i32, i32, i32) {
    %c0_i32 = arith.constant 0 : i32
    %c0_i32_0 = arith.constant 0 : i32
    %c0_i32_1 = arith.constant 0 : i32
    return %arg0, %c0_i32, %c0_i32_0 : i32, i32, i32
  }
  func.func @transform_1(%arg0: i32) -> (i32, i32) {
    %c0_i32 = arith.constant 0 : i32
    %c0_i32_0 = arith.constant 0 : i32
    %c0_i32_1 = arith.constant 0 : i32
    return %c0_i32, %c0_i32_0 : i32, i32
  }
  func.func @transform_2(%arg0: i32) -> (i32, i32) {
    %c0_i32 = arith.constant 0 : i32
    %c0_i32_0 = arith.constant 0 : i32
    %c0_i32_1 = arith.constant 0 : i32
    return %c0_i32, %c0_i32_0 : i32, i32
  }
  func.func @transform_3(%arg0: i32) -> (i32, i32, i32) {
    %c0_i32 = arith.constant 0 : i32
    %c0_i32_0 = arith.constant 0 : i32
    %c0_i32_1 = arith.constant 0 : i32
    return %arg0, %c0_i32, %c0_i32_0 : i32, i32, i32
  }
}

module attributes {stable_mosaic.version = 11 : i64} {
  func.func @_stats2_kernel(%arg0: i32, %arg1: memref<8x8x7xf32, #tpu.memory_space<vmem>>, %arg2: memref<7x128xbf16, #tpu.memory_space<vmem>>, %arg3: memref<1x128xf32, #tpu.memory_space<vmem>>, %arg4: memref<1x128xf32, #tpu.memory_space<vmem>>, %arg5: memref<1x128xf32, #tpu.memory_space<vmem>>, %arg6: memref<128x128xbf16, #tpu.memory_space<vmem>>, %arg7: memref<1x128xf32, #tpu.memory_space<vmem>>, %arg8: memref<1x2x128xf32, #tpu.memory_space<vmem>>) attributes {dimension_semantics = [#tpu.dimension_semantics<parallel>], iteration_bounds = array<i64: 1>, scalar_prefetch = 0 : i64, scratch_operands = 0 : i64, tpu.core_type = #tpu.core_type<tc>, window_params = [{transform_indices = @transform_0, window_bounds = array<i64: 8, 8, 7>}, {pipeline_mode = #tpu.pipeline_mode<synchronous>, transform_indices = @transform_1, window_bounds = array<i64: 7, 128>}, {pipeline_mode = #tpu.pipeline_mode<synchronous>, transform_indices = @transform_2, window_bounds = array<i64: 1, 128>}, {pipeline_mode = #tpu.pipeline_mode<synchronous>, transform_indices = @transform_3, window_bounds = array<i64: 1, 128>}, {pipeline_mode = #tpu.pipeline_mode<synchronous>, transform_indices = @transform_4, window_bounds = array<i64: 1, 128>}, {pipeline_mode = #tpu.pipeline_mode<synchronous>, transform_indices = @transform_5, window_bounds = array<i64: 128, 128>}, {pipeline_mode = #tpu.pipeline_mode<synchronous>, transform_indices = @transform_6, window_bounds = array<i64: 1, 128>}, {transform_indices = @transform_7, window_bounds = array<i64: 1, 2, 128>}]} {
    %c0 = arith.constant 0 : index
    %c0_0 = arith.constant 0 : index
    %c0_1 = arith.constant 0 : index
    %0 = vector.load %arg1[%c0, %c0_0, %c0_1] : memref<8x8x7xf32, #tpu.memory_space<vmem>>, vector<8x8x7xf32>
    %1 = vector.shape_cast %0 : vector<8x8x7xf32> to vector<64x7xf32>
    %2 = arith.truncf %1 : vector<64x7xf32> to vector<64x7xbf16>
    %c0_2 = arith.constant 0 : index
    %c0_3 = arith.constant 0 : index
    %3 = vector.load %arg2[%c0_2, %c0_3] : memref<7x128xbf16, #tpu.memory_space<vmem>>, vector<7x128xbf16>
    %cst = arith.constant dense<0.000000e+00> : vector<64x128xf32>
    %4 = tpu.matmul %2, %3, %cst {dimension_numbers = #tpu.dot_dimension_numbers<[1], [0], [0], [1], [0, 0, 1, 1], [], []>} : vector<64x7xbf16>, vector<7x128xbf16>, vector<64x128xf32> -> vector<64x128xf32>
    %c0_4 = arith.constant 0 : index
    %c0_5 = arith.constant 0 : index
    %5 = vector.load %arg3[%c0_4, %c0_5] : memref<1x128xf32, #tpu.memory_space<vmem>>, vector<1x128xf32>
    %6 = vector.broadcast %5 : vector<1x128xf32> to vector<64x128xf32>
    %7 = arith.addf %4, %6 : vector<64x128xf32>
    %c0_6 = arith.constant 0 : index
    %c0_7 = arith.constant 0 : index
    %8 = vector.load %arg4[%c0_6, %c0_7] : memref<1x128xf32, #tpu.memory_space<vmem>>, vector<1x128xf32>
    %9 = vector.broadcast %8 : vector<1x128xf32> to vector<64x128xf32>
    %10 = arith.subf %7, %9 : vector<64x128xf32>
    %c0_8 = arith.constant 0 : index
    %c0_9 = arith.constant 0 : index
    %11 = vector.load %arg5[%c0_8, %c0_9] : memref<1x128xf32, #tpu.memory_space<vmem>>, vector<1x128xf32>
    %12 = vector.broadcast %11 : vector<1x128xf32> to vector<64x128xf32>
    %13 = arith.mulf %10, %12 : vector<64x128xf32>
    %cst_10 = arith.constant 0.000000e+00 : f32
    %14 = vector.broadcast %cst_10 : f32 to vector<64x128xf32>
    %15 = arith.maximumf %13, %14 : vector<64x128xf32>
    %16 = arith.truncf %15 : vector<64x128xf32> to vector<64x128xbf16>
    %c0_11 = arith.constant 0 : index
    %c0_12 = arith.constant 0 : index
    %17 = vector.load %arg6[%c0_11, %c0_12] : memref<128x128xbf16, #tpu.memory_space<vmem>>, vector<128x128xbf16>
    %cst_13 = arith.constant dense<0.000000e+00> : vector<64x128xf32>
    %18 = tpu.matmul %16, %17, %cst_13 {dimension_numbers = #tpu.dot_dimension_numbers<[1], [0], [0], [1], [0, 0, 1, 1], [], []>} : vector<64x128xbf16>, vector<128x128xbf16>, vector<64x128xf32> -> vector<64x128xf32>
    %c0_14 = arith.constant 0 : index
    %c0_15 = arith.constant 0 : index
    %19 = vector.load %arg7[%c0_14, %c0_15] : memref<1x128xf32, #tpu.memory_space<vmem>>, vector<1x128xf32>
    %20 = vector.broadcast %19 : vector<1x128xf32> to vector<64x128xf32>
    %21 = arith.addf %18, %20 : vector<64x128xf32>
    %cst_16 = arith.constant dense<0.000000e+00> : vector<128xf32>
    %22 = vector.multi_reduction <add>, %21, %cst_16 [0] : vector<64x128xf32> to vector<128xf32>
    %23 = vector.shape_cast %22 : vector<128xf32> to vector<1x1x128xf32>
    %24 = arith.mulf %21, %21 : vector<64x128xf32>
    %cst_17 = arith.constant dense<0.000000e+00> : vector<128xf32>
    %25 = vector.multi_reduction <add>, %24, %cst_17 [0] : vector<64x128xf32> to vector<128xf32>
    %26 = vector.shape_cast %25 : vector<128xf32> to vector<1x1x128xf32>
    %27 = tpu.concatenate %23, %26 in 1 : vector<1x1x128xf32>, vector<1x1x128xf32> -> vector<1x2x128xf32>
    %c0_18 = arith.constant 0 : index
    %c0_19 = arith.constant 0 : index
    %c0_20 = arith.constant 0 : index
    %28 = vector.load %arg8[%c0_18, %c0_19, %c0_20] : memref<1x2x128xf32, #tpu.memory_space<vmem>>, vector<1x2x128xf32>
    tpu.vector_store %arg8[%c0_18, %c0_19, %c0_20], %27 {strides = array<i32>} : memref<1x2x128xf32, #tpu.memory_space<vmem>>, vector<1x2x128xf32>,
    return
  }
  func.func @transform_0(%arg0: i32) -> (i32, i32, i32) {
    %c0_i32 = arith.constant 0 : i32
    %c0_i32_0 = arith.constant 0 : i32
    %c0_i32_1 = arith.constant 0 : i32
    return %arg0, %c0_i32, %c0_i32_0 : i32, i32, i32
  }
  func.func @transform_1(%arg0: i32) -> (i32, i32) {
    %c0_i32 = arith.constant 0 : i32
    %c0_i32_0 = arith.constant 0 : i32
    %c0_i32_1 = arith.constant 0 : i32
    return %c0_i32, %c0_i32_0 : i32, i32
  }
  func.func @transform_2(%arg0: i32) -> (i32, i32) {
    %c0_i32 = arith.constant 0 : i32
    %c0_i32_0 = arith.constant 0 : i32
    %c0_i32_1 = arith.constant 0 : i32
    return %c0_i32, %c0_i32_0 : i32, i32
  }
  func.func @transform_3(%arg0: i32) -> (i32, i32) {
    %c0_i32 = arith.constant 0 : i32
    %c0_i32_0 = arith.constant 0 : i32
    %c0_i32_1 = arith.constant 0 : i32
    return %c0_i32, %c0_i32_0 : i32, i32
  }
  func.func @transform_4(%arg0: i32) -> (i32, i32) {
    %c0_i32 = arith.constant 0 : i32
    %c0_i32_0 = arith.constant 0 : i32
    %c0_i32_1 = arith.constant 0 : i32
    return %c0_i32, %c0_i32_0 : i32, i32
  }
  func.func @transform_5(%arg0: i32) -> (i32, i32) {
    %c0_i32 = arith.constant 0 : i32
    %c0_i32_0 = arith.constant 0 : i32
    %c0_i32_1 = arith.constant 0 : i32
    return %c0_i32, %c0_i32_0 : i32, i32
  }
  func.func @transform_6(%arg0: i32) -> (i32, i32) {
    %c0_i32 = arith.constant 0 : i32
    %c0_i32_0 = arith.constant 0 : i32
    %c0_i32_1 = arith.constant 0 : i32
    return %c0_i32, %c0_i32_0 : i32, i32
  }
  func.func @transform_7(%arg0: i32) -> (i32, i32, i32) {
    %c0_i32 = arith.constant 0 : i32
    %c0_i32_0 = arith.constant 0 : i32
    %c0_i32_1 = arith.constant 0 : i32
    return %arg0, %c0_i32, %c0_i32_0 : i32, i32, i32
  }
}

module attributes {stable_mosaic.version = 11 : i64} {
  func.func @_fused_kernel(%arg0: i32, %arg1: memref<8x8x7xf32, #tpu.memory_space<vmem>>, %arg2: memref<7x128xbf16, #tpu.memory_space<vmem>>, %arg3: memref<1x128xf32, #tpu.memory_space<vmem>>, %arg4: memref<1x128xf32, #tpu.memory_space<vmem>>, %arg5: memref<1x128xf32, #tpu.memory_space<vmem>>, %arg6: memref<128x128xbf16, #tpu.memory_space<vmem>>, %arg7: memref<1x128xf32, #tpu.memory_space<vmem>>, %arg8: memref<1x128xf32, #tpu.memory_space<vmem>>, %arg9: memref<1x128xf32, #tpu.memory_space<vmem>>, %arg10: memref<128x128xbf16, #tpu.memory_space<vmem>>, %arg11: memref<1x128xf32, #tpu.memory_space<vmem>>, %arg12: memref<8x128xf32, #tpu.memory_space<vmem>>) attributes {dimension_semantics = [#tpu.dimension_semantics<parallel>], iteration_bounds = array<i64: 1>, scalar_prefetch = 0 : i64, scratch_operands = 0 : i64, tpu.core_type = #tpu.core_type<tc>, window_params = [{transform_indices = @transform_0, window_bounds = array<i64: 8, 8, 7>}, {pipeline_mode = #tpu.pipeline_mode<synchronous>, transform_indices = @transform_1, window_bounds = array<i64: 7, 128>}, {pipeline_mode = #tpu.pipeline_mode<synchronous>, transform_indices = @transform_2, window_bounds = array<i64: 1, 128>}, {pipeline_mode = #tpu.pipeline_mode<synchronous>, transform_indices = @transform_3, window_bounds = array<i64: 1, 128>}, {pipeline_mode = #tpu.pipeline_mode<synchronous>, transform_indices = @transform_4, window_bounds = array<i64: 1, 128>}, {pipeline_mode = #tpu.pipeline_mode<synchronous>, transform_indices = @transform_5, window_bounds = array<i64: 128, 128>}, {pipeline_mode = #tpu.pipeline_mode<synchronous>, transform_indices = @transform_6, window_bounds = array<i64: 1, 128>}, {pipeline_mode = #tpu.pipeline_mode<synchronous>, transform_indices = @transform_7, window_bounds = array<i64: 1, 128>}, {pipeline_mode = #tpu.pipeline_mode<synchronous>, transform_indices = @transform_8, window_bounds = array<i64: 1, 128>}, {pipeline_mode = #tpu.pipeline_mode<synchronous>, transform_indices = @transform_9, window_bounds = array<i64: 128, 128>}, {pipeline_mode = #tpu.pipeline_mode<synchronous>, transform_indices = @transform_10, window_bounds = array<i64: 1, 128>}, {transform_indices = @transform_11, window_bounds = array<i64: 8, 128>}]} {
    %c0 = arith.constant 0 : index
    %c0_0 = arith.constant 0 : index
    %c0_1 = arith.constant 0 : index
    %0 = vector.load %arg1[%c0, %c0_0, %c0_1] : memref<8x8x7xf32, #tpu.memory_space<vmem>>, vector<8x8x7xf32>
    %1 = vector.shape_cast %0 : vector<8x8x7xf32> to vector<64x7xf32>
    %2 = arith.truncf %1 : vector<64x7xf32> to vector<64x7xbf16>
    %c0_2 = arith.constant 0 : index
    %c0_3 = arith.constant 0 : index
    %3 = vector.load %arg2[%c0_2, %c0_3] : memref<7x128xbf16, #tpu.memory_space<vmem>>, vector<7x128xbf16>
    %cst = arith.constant dense<0.000000e+00> : vector<64x128xf32>
    %4 = tpu.matmul %2, %3, %cst {dimension_numbers = #tpu.dot_dimension_numbers<[1], [0], [0], [1], [0, 0, 1, 1], [], []>} : vector<64x7xbf16>, vector<7x128xbf16>, vector<64x128xf32> -> vector<64x128xf32>
    %c0_4 = arith.constant 0 : index
    %c0_5 = arith.constant 0 : index
    %5 = vector.load %arg3[%c0_4, %c0_5] : memref<1x128xf32, #tpu.memory_space<vmem>>, vector<1x128xf32>
    %6 = vector.broadcast %5 : vector<1x128xf32> to vector<64x128xf32>
    %7 = arith.addf %4, %6 : vector<64x128xf32>
    %c0_6 = arith.constant 0 : index
    %c0_7 = arith.constant 0 : index
    %8 = vector.load %arg4[%c0_6, %c0_7] : memref<1x128xf32, #tpu.memory_space<vmem>>, vector<1x128xf32>
    %9 = vector.broadcast %8 : vector<1x128xf32> to vector<64x128xf32>
    %10 = arith.subf %7, %9 : vector<64x128xf32>
    %c0_8 = arith.constant 0 : index
    %c0_9 = arith.constant 0 : index
    %11 = vector.load %arg5[%c0_8, %c0_9] : memref<1x128xf32, #tpu.memory_space<vmem>>, vector<1x128xf32>
    %12 = vector.broadcast %11 : vector<1x128xf32> to vector<64x128xf32>
    %13 = arith.mulf %10, %12 : vector<64x128xf32>
    %cst_10 = arith.constant 0.000000e+00 : f32
    %14 = vector.broadcast %cst_10 : f32 to vector<64x128xf32>
    %15 = arith.maximumf %13, %14 : vector<64x128xf32>
    %16 = arith.truncf %15 : vector<64x128xf32> to vector<64x128xbf16>
    %c0_11 = arith.constant 0 : index
    %c0_12 = arith.constant 0 : index
    %17 = vector.load %arg6[%c0_11, %c0_12] : memref<128x128xbf16, #tpu.memory_space<vmem>>, vector<128x128xbf16>
    %cst_13 = arith.constant dense<0.000000e+00> : vector<64x128xf32>
    %18 = tpu.matmul %16, %17, %cst_13 {dimension_numbers = #tpu.dot_dimension_numbers<[1], [0], [0], [1], [0, 0, 1, 1], [], []>} : vector<64x128xbf16>, vector<128x128xbf16>, vector<64x128xf32> -> vector<64x128xf32>
    %c0_14 = arith.constant 0 : index
    %c0_15 = arith.constant 0 : index
    %19 = vector.load %arg7[%c0_14, %c0_15] : memref<1x128xf32, #tpu.memory_space<vmem>>, vector<1x128xf32>
    %20 = vector.broadcast %19 : vector<1x128xf32> to vector<64x128xf32>
    %21 = arith.addf %18, %20 : vector<64x128xf32>
    %c0_16 = arith.constant 0 : index
    %c0_17 = arith.constant 0 : index
    %22 = vector.load %arg8[%c0_16, %c0_17] : memref<1x128xf32, #tpu.memory_space<vmem>>, vector<1x128xf32>
    %23 = vector.broadcast %22 : vector<1x128xf32> to vector<64x128xf32>
    %24 = arith.subf %21, %23 : vector<64x128xf32>
    %c0_18 = arith.constant 0 : index
    %c0_19 = arith.constant 0 : index
    %25 = vector.load %arg9[%c0_18, %c0_19] : memref<1x128xf32, #tpu.memory_space<vmem>>, vector<1x128xf32>
    %26 = vector.broadcast %25 : vector<1x128xf32> to vector<64x128xf32>
    %27 = arith.mulf %24, %26 : vector<64x128xf32>
    %cst_20 = arith.constant 0.000000e+00 : f32
    %28 = vector.broadcast %cst_20 : f32 to vector<64x128xf32>
    %29 = arith.maximumf %27, %28 : vector<64x128xf32>
    %30 = arith.truncf %29 : vector<64x128xf32> to vector<64x128xbf16>
    %c0_21 = arith.constant 0 : index
    %c0_22 = arith.constant 0 : index
    %31 = vector.load %arg10[%c0_21, %c0_22] : memref<128x128xbf16, #tpu.memory_space<vmem>>, vector<128x128xbf16>
    %cst_23 = arith.constant dense<0.000000e+00> : vector<64x128xf32>
    %32 = tpu.matmul %30, %31, %cst_23 {dimension_numbers = #tpu.dot_dimension_numbers<[1], [0], [0], [1], [0, 0, 1, 1], [], []>} : vector<64x128xbf16>, vector<128x128xbf16>, vector<64x128xf32> -> vector<64x128xf32>
    %33 = vector.shape_cast %32 : vector<64x128xf32> to vector<8x8x128xf32>
    %cst_24 = arith.constant dense<0xFF800000> : vector<8x128xf32>
    %34 = vector.multi_reduction <maximumf>, %33, %cst_24 [1] : vector<8x8x128xf32> to vector<8x128xf32>
    %c0_25 = arith.constant 0 : index
    %c0_26 = arith.constant 0 : index
    %35 = vector.load %arg11[%c0_25, %c0_26] : memref<1x128xf32, #tpu.memory_space<vmem>>, vector<1x128xf32>
    %36 = vector.broadcast %35 : vector<1x128xf32> to vector<8x128xf32>
    %37 = arith.addf %34, %36 : vector<8x128xf32>
    %c0_27 = arith.constant 0 : index
    %c0_28 = arith.constant 0 : index
    %38 = vector.load %arg12[%c0_27, %c0_28] : memref<8x128xf32, #tpu.memory_space<vmem>>, vector<8x128xf32>
    tpu.vector_store %arg12[%c0_27, %c0_28], %37 {strides = array<i32>} : memref<8x128xf32, #tpu.memory_space<vmem>>, vector<8x128xf32>,
    return
  }
  func.func @transform_0(%arg0: i32) -> (i32, i32, i32) {
    %c0_i32 = arith.constant 0 : i32
    %c0_i32_0 = arith.constant 0 : i32
    %c0_i32_1 = arith.constant 0 : i32
    return %arg0, %c0_i32, %c0_i32_0 : i32, i32, i32
  }
  func.func @transform_1(%arg0: i32) -> (i32, i32) {
    %c0_i32 = arith.constant 0 : i32
    %c0_i32_0 = arith.constant 0 : i32
    %c0_i32_1 = arith.constant 0 : i32
    return %c0_i32, %c0_i32_0 : i32, i32
  }
  func.func @transform_2(%arg0: i32) -> (i32, i32) {
    %c0_i32 = arith.constant 0 : i32
    %c0_i32_0 = arith.constant 0 : i32
    %c0_i32_1 = arith.constant 0 : i32
    return %c0_i32, %c0_i32_0 : i32, i32
  }
  func.func @transform_3(%arg0: i32) -> (i32, i32) {
    %c0_i32 = arith.constant 0 : i32
    %c0_i32_0 = arith.constant 0 : i32
    %c0_i32_1 = arith.constant 0 : i32
    return %c0_i32, %c0_i32_0 : i32, i32
  }
  func.func @transform_4(%arg0: i32) -> (i32, i32) {
    %c0_i32 = arith.constant 0 : i32
    %c0_i32_0 = arith.constant 0 : i32
    %c0_i32_1 = arith.constant 0 : i32
    return %c0_i32, %c0_i32_0 : i32, i32
  }
  func.func @transform_5(%arg0: i32) -> (i32, i32) {
    %c0_i32 = arith.constant 0 : i32
    %c0_i32_0 = arith.constant 0 : i32
    %c0_i32_1 = arith.constant 0 : i32
    return %c0_i32, %c0_i32_0 : i32, i32
  }
  func.func @transform_6(%arg0: i32) -> (i32, i32) {
    %c0_i32 = arith.constant 0 : i32
    %c0_i32_0 = arith.constant 0 : i32
    %c0_i32_1 = arith.constant 0 : i32
    return %c0_i32, %c0_i32_0 : i32, i32
  }
  func.func @transform_7(%arg0: i32) -> (i32, i32) {
    %c0_i32 = arith.constant 0 : i32
    %c0_i32_0 = arith.constant 0 : i32
    %c0_i32_1 = arith.constant 0 : i32
    return %c0_i32, %c0_i32_0 : i32, i32
  }
  func.func @transform_8(%arg0: i32) -> (i32, i32) {
    %c0_i32 = arith.constant 0 : i32
    %c0_i32_0 = arith.constant 0 : i32
    %c0_i32_1 = arith.constant 0 : i32
    return %c0_i32, %c0_i32_0 : i32, i32
  }
  func.func @transform_9(%arg0: i32) -> (i32, i32) {
    %c0_i32 = arith.constant 0 : i32
    %c0_i32_0 = arith.constant 0 : i32
    %c0_i32_1 = arith.constant 0 : i32
    return %c0_i32, %c0_i32_0 : i32, i32
  }
  func.func @transform_10(%arg0: i32) -> (i32, i32) {
    %c0_i32 = arith.constant 0 : i32
    %c0_i32_0 = arith.constant 0 : i32
    %c0_i32_1 = arith.constant 0 : i32
    return %c0_i32, %c0_i32_0 : i32, i32
  }
  func.func @transform_11(%arg0: i32) -> (i32, i32) {
    %c0_i32 = arith.constant 0 : i32
    %c0_i32_0 = arith.constant 0 : i32
    return %arg0, %c0_i32 : i32, i32
  }
}

</mosaic_0001>

<bundles_post_ra>
// kernel: pointnet_pallas.3
= control target key start
LH: loop header
LB: loop body
LE: loop exit
PB: predicated region body
PF: predicated region fallthrough
CT: control target
= control target key end

     0   :  { %vm48_vm0 = vcmask 1042432   ;;  %vm49_vm1 = vcmask 1043456   ;;  %v184_v1 = vmov 65535   ;;  %vm35_vm2 = vcmask 56320   ;;  %s242_s1 = inlined_call_operand.vmem [shape: bf16[7,128], index: 1, kind: input, shape index: {}]   ;;  %s243_s0 = inlined_call_operand.vmem [shape: f32[8,8,7], index: 0, kind: input, shape index: {}]   ;;  %s244_s2 = inlined_call_operand.vmem [shape: f32[1,128], index: 2, kind: input, shape index: {}]   ;;  %s245_s3 = inlined_call_operand.vmem [shape: f32[1,2,128], index: 3, kind: output, shape index: {}]  }
   0x1   :  { %v27_v0 = vld [vmem:[%s242_s1] sm:$0xf]  ;;  %v50_v2 = vsel %vm48_vm0, 4294967295, %v184_v1  ;;  %v16_v4 = vld [vmem:[%s243_s0 + $0x8] sm:$0xff]  ;;  %v17_v7 = vld [vmem:[%s243_s0 + $0x10] sm:$0xff]  ;;  %vm154_vm3 = vcmask 1040384  }
   0x2   :  { %v15_v3 = vld [vmem:[%s243_s0] sm:$0xff]  ;;  %v51_v5 = vsel %vm49_vm1, %v50_v2, 0  ;;  %v18_v8 = vld [vmem:[%s243_s0 + $0x18] sm:$0xff]  ;;  %v20_v11 = vld [vmem:[%s243_s0 + $0x28] sm:$0xff] }
   0x3   :  { %v23_v6 = vpack.c.bf16 %v16_v4, %v15_v3  ;;  %v19_v9 = vld [vmem:[%s243_s0 + $0x20] sm:$0xff]  ;;  %v53_v10 = vand.u32 %v51_v5, %v27_v0  ;;  %v21_v12 = vld [vmem:[%s243_s0 + $0x30] sm:$0xff]  ;;  %v22_v13 = vld [vmem:[%s243_s0 + $0x38] sm:$0xff]  ;;  %v24_v15 = vpack.c.bf16 %v18_v8, %v17_v7 }
   0x4   :  { %v25_v14 = vpack.c.bf16 %v20_v11, %v19_v9  ;;  %v26_v16 = vpack.c.bf16 %v22_v13, %v21_v12  ;;  %v161_v17 = vld [vmem:[%s244_s2] ss:$0 sm:$0xff] }
   0x5   :  { %173 = vmatprep.mubr.msk.bf16.mxu0 %vm35_vm2, %v23_v6  ;;  %171 = vmatprep.subr.bf16.mxu0 %v53_v10 }
   0x6   :  { %181 = vmatprep.subr.bf16.mxu1 %v53_v10  ;;  %172 = vmatpush3.bf16.msra.mxu0 %v53_v10 }
   0x7   :  { %182 = vmatpush3.bf16.msra.mxu1 %v53_v10  ;;  %177 = vmatprep.mubr.msk.bf16.mxu1 %vm35_vm2, %v25_v14 }
   0x9   :  { %174 = vmatmul.mubr.msk.bf16.vlgmr.msra.gmra.mrb[0].mxu0 %vm35_vm2, %v24_v15 }
   0xa   :  { %178 = vmatmul.mubr.msk.bf16.vlgmr.msra.gmra.mrb[0].mxu1 %vm35_vm2, %v26_v16 }
  0xdc   :  { %v175_v18 = vpop.f32.mrb[0].mxu0 }
  0xdd   :  { %v179_v19 = vpop.f32.mrb[0].mxu1  ;;  %v89_v20 = vpop.f32.mrb[1].mxu0  ;;  %v98_v27 = vadd.f32 %v175_v18, %v161_v17 }
  0xde   :  { %v105_v21 = vpop.f32.mrb[1].mxu1  ;;  %v90_v22 = vadd.f32 %v161_v17, %v89_v20  ;;  %v176_v23 = vpop.f32.mrb[2].mxu0  ;;  %v114_v42 = vadd.f32 %v179_v19, %v161_v17 }
  0xdf   :  { %v180_v24 = vpop.f32.mrb[2].mxu1  ;;  %v92_v25 = vpop.f32.mrb[3].mxu0  ;;  %v106_v29 = vadd.f32 %v161_v17, %v105_v21  ;;  %v101_v31 = vadd.f32 %v176_v23, %v161_v17  ;;  %v135_v34 = vmul.f32 %v98_v27, %v98_v27 }
  0xe0   :  { %v108_v26 = vpop.f32.mrb[3].mxu1  ;;  %v93_v28 = vadd.f32 %v161_v17, %v92_v25  ;;  %v133_v30 = vmul.f32 %v90_v22, %v90_v22  ;;  %v117_v46 = vadd.f32 %v180_v24, %v161_v17  ;;  %v139_v49 = vmul.f32 %v114_v42, %v114_v42 }
  0xe1   :  { %v137_v37 = vmul.f32 %v106_v29, %v106_v29  ;;  %v136_v38 = vmul.f32 %v101_v31, %v101_v31  ;;  %v109_v41 = vadd.f32 %v161_v17, %v108_v26 }
  0xe2   :  { %v120_v32 = vadd.f32 %v93_v28, %v90_v22  ;;  %v134_v33 = vmul.f32 %v93_v28, %v93_v28  ;;  %v140_v52 = vmul.f32 %v117_v46, %v117_v46 }
  0xe3   :  { %v138_v48 = vmul.f32 %v109_v41, %v109_v41 }
  0xe4   :  { %v121_v35 = vadd.f32 %v120_v32, %v98_v27  ;;  %v141_v36 = vadd.f32 %v134_v33, %v133_v30 }
  0xe6   :  { %v142_v39 = vadd.f32 %v141_v36, %v135_v34  ;;  %v122_v40 = vadd.f32 %v121_v35, %v101_v31 }
  0xe8   :  { %v123_v43 = vadd.f32 %v122_v40, %v106_v29  ;;  %v143_v44 = vadd.f32 %v142_v39, %v136_v38 }
  0xea   :  { %v144_v45 = vadd.f32 %v143_v44, %v137_v37  ;;  %v124_v47 = vadd.f32 %v123_v43, %v109_v41 }
  0xec   :  { %v125_v50 = vadd.f32 %v124_v47, %v114_v42  ;;  %v145_v51 = vadd.f32 %v144_v45, %v138_v48 }
  0xee   :  { %v126_v53 = vadd.f32 %v125_v50, %v117_v46  ;;  %v146_v54 = vadd.f32 %v145_v51, %v139_v49 }
  0xf0   :  { %v127_v55 = vrot.slane %v126_v53, 4  ;;  %v147_v56 = vadd.f32 %v146_v54, %v140_v52 }
  0xf2   :  { %v128_v57 = vadd.f32 %v127_v55, %v126_v53  ;;  %v148_v58 = vrot.slane %v147_v56, 4 }
  0xf4   :  { %v129_v59 = vrot.slane %v128_v57, 2  ;;  %v149_v60 = vadd.f32 %v148_v58, %v147_v56 }
  0xf6   :  { %v130_v61 = vadd.f32 %v129_v59, %v128_v57  ;;  %v150_v62 = vrot.slane %v149_v60, 2 }
  0xf8   :  { %v131_v63 = vrot.slane %v130_v61, 1  ;;  %v151_v0 = vadd.f32 %v150_v62, %v149_v60 }
  0xfa   :  { %v152_v1 = vrot.slane %v151_v0, 1  ;;  %v132_v2 = vadd.f32 %v131_v63, %v130_v61 }
  0xfc   :  { %v153_v3 = vadd.f32 %v152_v1, %v151_v0 }
  0xfe   :  { %v155_v4 = vsel %vm154_vm3, %v132_v2, %v153_v3 }
  0xff   :  { %156 = vst [vmem:[%s245_s3] sm:$0x3] %v155_v4 }

// kernel: pointnet_pallas.4
= control target key start
LH: loop header
LB: loop body
LE: loop exit
PB: predicated region body
PF: predicated region fallthrough
CT: control target
= control target key end

     0   :  { %vm60_vm0 = vcmask 1042432   ;;  %vm61_vm1 = vcmask 1043456   ;;  %v443_v1 = vmov 65535   ;;  %vm47_vm2 = vcmask 56320   ;;  %s554_s1 = inlined_call_operand.vmem [shape: bf16[7,128], index: 1, kind: input, shape index: {}]   ;;  %s555_s0 = inlined_call_operand.vmem [shape: f32[8,8,7], index: 0, kind: input, shape index: {}]   ;;  %s556_s5 = inlined_call_operand.vmem [shape: bf16[128,128], index: 5, kind: input, shape index: {}]   ;;  %s557_s2 = inlined_call_operand.vmem [shape: f32[1,128], index: 2, kind: input, shape index: {}]   ;;  %s558_s3 = inlined_call_operand.vmem [shape: f32[1,128], index: 3, kind: input, shape index: {}]   ;;  %s559_s4 = inlined_call_operand.vmem [shape: f32[1,128], index: 4, kind: input, shape index: {}]   ;;  %s560_s6 = inlined_call_operand.vmem [shape: f32[1,128], index: 6, kind: input, shape index: {}]   ;;  %s561_s7 = inlined_call_operand.vmem [shape: f32[1,2,128], index: 7, kind: output, shape index: {}]  }
   0x1   :  { %v39_v0 = vld [vmem:[%s554_s1] sm:$0xf]  ;;  %v62_v2 = vsel %vm60_vm0, 4294967295, %v443_v1  ;;  %v28_v4 = vld [vmem:[%s555_s0 + $0x8] sm:$0xff]  ;;  %v29_v7 = vld [vmem:[%s555_s0 + $0x10] sm:$0xff]  ;;  %vm344_vm3 = vcmask 1040384  }
   0x2   :  { %v27_v3 = vld [vmem:[%s555_s0] sm:$0xff]  ;;  %v63_v5 = vsel %vm61_vm1, %v62_v2, 0  ;;  %v30_v8 = vld [vmem:[%s555_s0 + $0x18] sm:$0xff]  ;;  %v32_v11 = vld [vmem:[%s555_s0 + $0x28] sm:$0xff] }
   0x3   :  { %v35_v6 = vpack.c.bf16 %v28_v4, %v27_v3  ;;  %v65_v9 = vand.u32 %v63_v5, %v39_v0  ;;  %v31_v10 = vld [vmem:[%s555_s0 + $0x20] sm:$0xff]  ;;  %v36_v13 = vpack.c.bf16 %v30_v8, %v29_v7  ;;  %v436_v15 = vld [vmem:[%s556_s5 + $0x8] sm:$0xff]   ;;  %v33_v16 = vld [vmem:[%s555_s0 + $0x30] sm:$0xff] }
   0x4   :  { %v435_v12 = vld [vmem:[%s556_s5] sm:$0xff]   ;;  %v37_v14 = vpack.c.bf16 %v32_v11, %v31_v10  ;;  %v34_v17 = vld [vmem:[%s555_s0 + $0x38] sm:$0xff]  ;;  %v437_v18 = vld [vmem:[%s556_s5 + $0x10] sm:$0xff]  }
   0x5   :  { %386 = vmatprep.mubr.msk.bf16.mxu0 %vm47_vm2, %v35_v6  ;;  %384 = vmatprep.subr.bf16.mxu0 %v65_v9  ;;  %v38_v19 = vpack.c.bf16 %v34_v17, %v33_v16  ;;  %v438_v20 = vld [vmem:[%s556_s5 + $0x18] sm:$0xff]   ;;  %v439_v21 = vld [vmem:[%s556_s5 + $0x20] sm:$0xff]   ;;  %v440_v22 = vld [vmem:[%s556_s5 + $0x28] sm:$0xff]  }
   0x6   :  { %385 = vmatpush3.bf16.msra.mxu0 %v65_v9  ;;  %418 = vmatprep.subr.bf16.mxu1 %v435_v12  ;;  %v441_v23 = vld [vmem:[%s556_s5 + $0x30] sm:$0xff]   ;;  %v442_v24 = vld [vmem:[%s556_s5 + $0x38] sm:$0xff]   ;;  %v351_v25 = vld [vmem:[%s557_s2] ss:$0 sm:$0xff] }
   0x7   :  { %394 = vmatprep.subr.bf16.mxu0 %v435_v12  ;;  %426 = vmatpush3.bf16.msra.mxu1 %v435_v12  ;;  %v356_v27 = vld [vmem:[%s558_s3] ss:$0 sm:$0xff] }
   0x8   :  { %419 = vmatprep.subr.bf16.mxu1 %v436_v15  ;;  %v357_v30 = vld [vmem:[%s559_s4] ss:$0 sm:$0xff] }
   0x9   :  { %387 = vmatmul.mubr.msk.bf16.vlgmr.msra.gmra.mrb[0].mxu0 %vm47_vm2, %v36_v13  ;;  %v358_v8 = vld [vmem:[%s560_s6] ss:$0 sm:$0xff] }
   0xa   :  { %390 = vmatprep.mubr.msk.bf16.mxu0 %vm47_vm2, %v37_v14  ;;  %395 = vmatpush3.bf16.msra.mxu0 %v435_v12 }
   0xb   :  { %396 = vmatprep.subr.bf16.mxu0 %v436_v15  ;;  %427 = vmatpush3.bf16.msra.mxu1 %v436_v15 }
   0xc   :  { %420 = vmatprep.subr.bf16.mxu1 %v437_v18 }
   0xe   :  { %397 = vmatpush3.bf16.msra.mxu0 %v436_v15 }
   0xf   :  { %398 = vmatprep.subr.bf16.mxu0 %v437_v18  ;;  %428 = vmatpush3.bf16.msra.mxu1 %v437_v18 }
  0x10   :  { %421 = vmatprep.subr.bf16.mxu1 %v438_v20 }
  0x11   :  { %391 = vmatmul.mubr.msk.bf16.gmra.mrb[4].mxu0 %vm47_vm2, %v38_v19 }
  0x12   :  { %399 = vmatpush3.bf16.msra.mxu0 %v437_v18 }
  0x13   :  { %400 = vmatprep.subr.bf16.mxu0 %v438_v20  ;;  %429 = vmatpush3.bf16.msra.mxu1 %v438_v20 }
  0x14   :  { %422 = vmatprep.subr.bf16.mxu1 %v439_v21 }
  0x16   :  { %401 = vmatpush3.bf16.msra.mxu0 %v438_v20 }
  0x17   :  { %402 = vmatprep.subr.bf16.mxu0 %v439_v21  ;;  %430 = vmatpush3.bf16.msra.mxu1 %v439_v21 }
  0x18   :  { %423 = vmatprep.subr.bf16.mxu1 %v440_v22 }
  0x1a   :  { %403 = vmatpush3.bf16.msra.mxu0 %v439_v21 }
  0x1b   :  { %404 = vmatprep.subr.bf16.mxu0 %v440_v22  ;;  %431 = vmatpush3.bf16.msra.mxu1 %v440_v22 }
  0x1c   :  { %424 = vmatprep.subr.bf16.mxu1 %v441_v23 }
  0x1e   :  { %405 = vmatpush3.bf16.msra.mxu0 %v440_v22 }
  0x1f   :  { %406 = vmatprep.subr.bf16.mxu0 %v441_v23  ;;  %432 = vmatpush3.bf16.msra.mxu1 %v441_v23 }
  0x20   :  { %425 = vmatprep.subr.bf16.mxu1 %v442_v24 }
  0x22   :  { %407 = vmatpush3.bf16.msra.mxu0 %v441_v23 }
  0x23   :  { %408 = vmatprep.subr.bf16.mxu0 %v442_v24  ;;  %433 = vmatpush3.bf16.msra.mxu1 %v442_v24 }
  0x26   :  { %409 = vmatpush3.bf16.msra.mxu0 %v442_v24 }
  0xdc   :  { %v388_v26 = vpop.f32.mrb[0].mxu0 }
  0xdd   :  { %v110_v28 = vadd.f32 %v388_v26, %v351_v25  ;;  %v101_v29 = vpop.f32.mrb[1].mxu0 }
  0xde   :  { %v102_v31 = vadd.f32 %v351_v25, %v101_v29  ;;  %v389_v32 = vpop.f32.mrb[2].mxu0 }
  0xdf   :  { %v141_v33 = vsub.f32 %v110_v28, %v356_v27  ;;  %v113_v34 = vadd.f32 %v389_v32, %v351_v25  ;;  %v104_v35 = vpop.f32.mrb[3].mxu0 }
  0xe0   :  { %v139_v36 = vsub.f32 %v102_v31, %v356_v27  ;;  %v105_v37 = vadd.f32 %v351_v25, %v104_v35 }
  0xe1   :  { %v156_v38 = vmul.f32 %v357_v30, %v141_v33  ;;  %v142_v39 = vsub.f32 %v113_v34, %v356_v27 }
  0xe2   :  { %v154_v40 = vmul.f32 %v357_v30, %v139_v36  ;;  %v140_v41 = vsub.f32 %v105_v37, %v356_v27 }
  0xe3   :  { %v157_v42 = vmul.f32 %v357_v30, %v142_v39  ;;  %v164_v45 = vmax.f32 %v156_v38, 0.0 }
  0xe4   :  { %v155_v43 = vmul.f32 %v357_v30, %v140_v41  ;;  %v392_v44 = vpop.f32.mrb[4].mxu0  ;;  %v162_v49 = vmax.f32 %v154_v40, 0.0 }
  0xe5   :  { %v165_v46 = vmax.f32 %v157_v42, 0.0  ;;  %v126_v47 = vadd.f32 %v392_v44, %v351_v25  ;;  %v117_v48 = vpop.f32.mrb[5].mxu0 }
  0xe6   :  { %v163_v50 = vmax.f32 %v155_v43, 0.0  ;;  %v118_v51 = vadd.f32 %v351_v25, %v117_v48  ;;  %v393_v52 = vpop.f32.mrb[6].mxu0 }
  0xe7   :  { %v171_v53 = vpack.c.bf16 %v165_v46, %v164_v45  ;;  %v145_v54 = vsub.f32 %v126_v47, %v356_v27  ;;  %v129_v55 = vadd.f32 %v393_v52, %v351_v25  ;;  %v120_v56 = vpop.f32.mrb[7].mxu0 }
  0xe8   :  { %v143_v57 = vsub.f32 %v118_v51, %v356_v27  ;;  %v121_v58 = vadd.f32 %v351_v25, %v120_v56  ;;  %v170_v59 = vpack.c.bf16 %v163_v50, %v162_v49 }
  0xe9   :  { %v160_v60 = vmul.f32 %v357_v30, %v145_v54  ;;  %v146_v61 = vsub.f32 %v129_v55, %v356_v27 }
  0xea   :  { %v144_v62 = vsub.f32 %v121_v58, %v356_v27  ;;  %410 = vmatprep.mubr.bf16.mxu0 %v170_v59  ;;  %v158_v63 = vmul.f32 %v357_v30, %v143_v57 }
  0xeb   :  { %v161_v0 = vmul.f32 %v357_v30, %v146_v61  ;;  %411 = vmatmul.mubr.bf16.vlgmr.msra.gmra.mrb[8].mxu0 %v171_v53  ;;  %v168_v2 = vmax.f32 %v160_v60, 0.0 }
  0xec   :  { %v159_v1 = vmul.f32 %v357_v30, %v144_v62  ;;  %v166_v4 = vmax.f32 %v158_v63, 0.0 }
  0xed   :  { %v169_v3 = vmax.f32 %v161_v0, 0.0 }
  0xee   :  { %v167_v5 = vmax.f32 %v159_v1, 0.0 }
  0xef   :  { %v173_v6 = vpack.c.bf16 %v169_v3, %v168_v2 }
  0xf0   :  { %v172_v7 = vpack.c.bf16 %v167_v5, %v166_v4 }
  0xf2   :  { %414 = vmatprep.mubr.bf16.mxu1 %v172_v7 }
  0xf3   :  { %415 = vmatmul.mubr.bf16.vlgmr.msra.gmra.mrb[0].mxu1 %v173_v6 }
 0x1be   :  { %v412_v9 = vpop.f32.mrb[8].mxu0 }
 0x1bf   :  { %v279_v10 = vpop.f32.mrb[9].mxu0  ;;  %v288_v14 = vadd.f32 %v412_v9, %v358_v8 }
 0x1c0   :  { %v280_v11 = vadd.f32 %v358_v8, %v279_v10  ;;  %v413_v12 = vpop.f32.mrb[10].mxu0 }
 0x1c1   :  { %v282_v13 = vpop.f32.mrb[11].mxu0  ;;  %v291_v17 = vadd.f32 %v413_v12, %v358_v8  ;;  %v325_v20 = vmul.f32 %v288_v14, %v288_v14 }
 0x1c2   :  { %v283_v15 = vadd.f32 %v358_v8, %v282_v13  ;;  %v323_v16 = vmul.f32 %v280_v11, %v280_v11 }
 0x1c3   :  { %v326_v25 = vmul.f32 %v291_v17, %v291_v17 }
 0x1c4   :  { %v310_v18 = vadd.f32 %v283_v15, %v280_v11  ;;  %v324_v19 = vmul.f32 %v283_v15, %v283_v15 }
 0x1c6   :  { %v311_v21 = vadd.f32 %v310_v18, %v288_v14  ;;  %v331_v22 = vadd.f32 %v324_v19, %v323_v16  ;;  %v416_v23 = vpop.f32.mrb[0].mxu1 }
 0x1c7   :  { %v295_v24 = vpop.f32.mrb[1].mxu1  ;;  %v304_v30 = vadd.f32 %v416_v23, %v358_v8 }
 0x1c8   :  { %v332_v26 = vadd.f32 %v331_v22, %v325_v20  ;;  %v296_v27 = vadd.f32 %v358_v8, %v295_v24  ;;  %v312_v28 = vadd.f32 %v311_v21, %v291_v17  ;;  %v417_v29 = vpop.f32.mrb[2].mxu1 }
 0x1c9   :  { %v298_v31 = vpop.f32.mrb[3].mxu1  ;;  %v307_v37 = vadd.f32 %v417_v29, %v358_v8  ;;  %v329_v40 = vmul.f32 %v304_v30, %v304_v30 }
 0x1ca   :  { %v313_v32 = vadd.f32 %v312_v28, %v296_v27  ;;  %v327_v33 = vmul.f32 %v296_v27, %v296_v27  ;;  %v333_v34 = vadd.f32 %v332_v26, %v326_v25  ;;  %v299_v35 = vadd.f32 %v358_v8, %v298_v31 }
 0x1cb   :  { %v330_v43 = vmul.f32 %v307_v37, %v307_v37 }
 0x1cc   :  { %v334_v36 = vadd.f32 %v333_v34, %v327_v33  ;;  %v314_v38 = vadd.f32 %v313_v32, %v299_v35  ;;  %v328_v39 = vmul.f32 %v299_v35, %v299_v35 }
 0x1ce   :  { %v315_v41 = vadd.f32 %v314_v38, %v304_v30  ;;  %v335_v42 = vadd.f32 %v334_v36, %v328_v39 }
 0x1d0   :  { %v316_v44 = vadd.f32 %v315_v41, %v307_v37  ;;  %v336_v45 = vadd.f32 %v335_v42, %v329_v40 }
 0x1d2   :  { %v317_v46 = vrot.slane %v316_v44, 4  ;;  %v337_v47 = vadd.f32 %v336_v45, %v330_v43 }
 0x1d4   :  { %v318_v48 = vadd.f32 %v317_v46, %v316_v44  ;;  %v338_v49 = vrot.slane %v337_v47, 4 }
 0x1d6   :  { %v319_v50 = vrot.slane %v318_v48, 2  ;;  %v339_v51 = vadd.f32 %v338_v49, %v337_v47 }
 0x1d8   :  { %v320_v52 = vadd.f32 %v319_v50, %v318_v48  ;;  %v340_v53 = vrot.slane %v339_v51, 2 }
 0x1da   :  { %v321_v54 = vrot.slane %v320_v52, 1  ;;  %v341_v55 = vadd.f32 %v340_v53, %v339_v51 }
 0x1dc   :  { %v342_v56 = vrot.slane %v341_v55, 1  ;;  %v322_v57 = vadd.f32 %v321_v54, %v320_v52 }
 0x1de   :  { %v343_v58 = vadd.f32 %v342_v56, %v341_v55 }
 0x1e0   :  { %v345_v59 = vsel %vm344_vm3, %v322_v57, %v343_v58 }
 0x1e1   :  { %346 = vst [vmem:[%s561_s7] sm:$0x3] %v345_v59 }

// kernel: pointnet_pallas.5
= control target key start
LH: loop header
LB: loop body
LE: loop exit
PB: predicated region body
PF: predicated region fallthrough
CT: control target
= control target key end

     0   :  { %vm73_vm0 = vcmask 1042432   ;;  %vm74_vm1 = vcmask 1043456   ;;  %v758_v2 = vmov 65535   ;;  %vm60_vm2 = vcmask 56320   ;;  %s932_s0 = inlined_call_operand.vmem [shape: f32[8,8,7], index: 0, kind: input, shape index: {}]   ;;  %s933_s1 = inlined_call_operand.vmem [shape: bf16[7,128], index: 1, kind: input, shape index: {}]   ;;  %s934_s2 = inlined_call_operand.vmem [shape: f32[1,128], index: 2, kind: input, shape index: {}]   ;;  %s935_s3 = inlined_call_operand.vmem [shape: f32[1,128], index: 3, kind: input, shape index: {}]   ;;  %s936_s4 = inlined_call_operand.vmem [shape: f32[1,128], index: 4, kind: input, shape index: {}]   ;;  %s937_s5 = inlined_call_operand.vmem [shape: bf16[128,128], index: 5, kind: input, shape index: {}]   ;;  %s938_s6 = inlined_call_operand.vmem [shape: f32[1,128], index: 6, kind: input, shape index: {}]   ;;  %s939_s7 = inlined_call_operand.vmem [shape: f32[1,128], index: 7, kind: input, shape index: {}]   ;;  %s940_s8 = inlined_call_operand.vmem [shape: f32[1,128], index: 8, kind: input, shape index: {}]   ;;  %s941_s9 = inlined_call_operand.vmem [shape: bf16[128,128], index: 9, kind: input, shape index: {}]   ;;  %s942_s10 = inlined_call_operand.vmem [shape: f32[1,128], index: 10, kind: input, shape index: {}]   ;;  %s943_s11 = inlined_call_operand.hbm [shape: f32[8,128], index: 11, kind: output, shape index: {}]  }
   0x1   :  { %v52_v0 = vld [vmem:[%s933_s1] sm:$0xf]  ;;  %v75_v3 = vsel %vm73_vm0, 4294967295, %v758_v2  ;;  %v41_v4 = vld [vmem:[%s932_s0 + $0x8] sm:$0xff]  ;;  %v42_v7 = vld [vmem:[%s932_s0 + $0x10] sm:$0xff] }
   0x2   :  { %v40_v1 = vld [vmem:[%s932_s0] sm:$0xff]  ;;  %v76_v5 = vsel %vm74_vm1, %v75_v3, 0  ;;  %v43_v8 = vld [vmem:[%s932_s0 + $0x18] sm:$0xff]  ;;  %v45_v11 = vld [vmem:[%s932_s0 + $0x28] sm:$0xff] }
   0x3   :  { %v48_v6 = vpack.c.bf16 %v41_v4, %v40_v1  ;;  %v44_v9 = vld [vmem:[%s932_s0 + $0x20] sm:$0xff]  ;;  %v78_v10 = vand.u32 %v76_v5, %v52_v0  ;;  %v49_v13 = vpack.c.bf16 %v43_v8, %v42_v7  ;;  %v719_v14 = vld [vmem:[%s937_s5 + $0x8] sm:$0xff]   ;;  %v46_v16 = vld [vmem:[%s932_s0 + $0x30] sm:$0xff] }
   0x4   :  { %v718_v12 = vld [vmem:[%s937_s5] sm:$0xff]   ;;  %v50_v15 = vpack.c.bf16 %v45_v11, %v44_v9  ;;  %v47_v17 = vld [vmem:[%s932_s0 + $0x38] sm:$0xff]  ;;  %v720_v18 = vld [vmem:[%s937_s5 + $0x10] sm:$0xff]  }
   0x5   :  { %660 = vmatprep.mubr.msk.bf16.mxu0 %vm60_vm2, %v48_v6  ;;  %658 = vmatprep.subr.bf16.mxu0 %v78_v10  ;;  %v721_v19 = vld [vmem:[%s937_s5 + $0x18] sm:$0xff]   ;;  %v51_v20 = vpack.c.bf16 %v47_v17, %v46_v16 }
   0x6   :  { %659 = vmatpush3.bf16.msra.mxu0 %v78_v10  ;;  %668 = vmatprep.subr.bf16.mxu1 %v718_v12 }
   0x7   :  { %669 = vmatpush3.bf16.msra.mxu1 %v718_v12 }
   0x8   :  { %670 = vmatprep.subr.bf16.mxu1 %v719_v14 }
   0x9   :  { %661 = vmatmul.mubr.msk.bf16.vlgmr.msra.gmra.mrb[0].mxu0 %vm60_vm2, %v49_v13 }
   0xa   :  { %664 = vmatprep.mubr.msk.bf16.mxu0 %vm60_vm2, %v50_v15 }
   0xb   :  { %671 = vmatpush3.bf16.msra.mxu1 %v719_v14 }
   0xc   :  { %672 = vmatprep.subr.bf16.mxu1 %v720_v18 }
   0xf   :  { %673 = vmatpush3.bf16.msra.mxu1 %v720_v18 }
  0x10   :  { %16 = vsyncpa [#allocation3], 0  ;;  %674 = vmatprep.subr.bf16.mxu1 %v721_v19  ;;  %v722_v21 = vld [vmem:[%s937_s5 + $0x20] sm:$0xff]   ;;  %v723_v22 = vld [vmem:[%s937_s5 + $0x28] sm:$0xff]   ;;  %vm566_vm3 = vcmask 1041409   ;;  %vm569_vm4 = vcmask 1042434  }
  0x11   :  { %665 = vmatmul.mubr.msk.bf16.gmra.mrb[4].mxu0 %vm60_vm2, %v51_v20  ;;  %v724_v23 = vld [vmem:[%s937_s5 + $0x30] sm:$0xff]   ;;  %v725_v24 = vld [vmem:[%s937_s5 + $0x38] sm:$0xff]   ;;  %v726_v25 = vld [vmem:[%s941_s9] sm:$0xff]   ;;  %vm572_vm5 = vcmask 1043459   ;;  %vm575_vm6 = vcmask 1044484   ;;  %vm578_vm7 = vcmask 1045509  }
  0x12   :  { %v727_v26 = vld [vmem:[%s941_s9 + $0x8] sm:$0xff]   ;;  %692 = vmatprep.subr.bf16.mxu0 %v726_v25  ;;  %v728_v27 = vld [vmem:[%s941_s9 + $0x10] sm:$0xff]   ;;  %v729_v28 = vld [vmem:[%s941_s9 + $0x18] sm:$0xff]   ;;  %vm581_vm8 = vcmask 1046534   ;;  %vm584_vm9 = vcmask 1047559  }
  0x13   :  { %675 = vmatpush3.bf16.msra.mxu1 %v721_v19  ;;  %693 = vmatpush3.bf16.msra.mxu0 %v726_v25  ;;  %v730_v29 = vld [vmem:[%s941_s9 + $0x20] sm:$0xff]   ;;  %v731_v13 = vld [vmem:[%s941_s9 + $0x28] sm:$0xff]   ;;  %v732_v14 = vld [vmem:[%s941_s9 + $0x30] sm:$0xff]  }
  0x14   :  { %676 = vmatprep.subr.bf16.mxu1 %v722_v21  ;;  %694 = vmatprep.subr.bf16.mxu0 %v727_v26  ;;  %v602_v30 = vld [vmem:[%s934_s2] ss:$0 sm:$0xff]  ;;  %v733_v15 = vld [vmem:[%s941_s9 + $0x38] sm:$0xff]  }
  0x15   :  { %v607_v32 = vld [vmem:[%s935_s3] ss:$0 sm:$0xff] }
  0x16   :  { %v608_v35 = vld [vmem:[%s936_s4] ss:$0 sm:$0xff] }
  0x17   :  { %677 = vmatpush3.bf16.msra.mxu1 %v722_v21  ;;  %695 = vmatpush3.bf16.msra.mxu0 %v727_v26  ;;  %v609_v16 = vld [vmem:[%s938_s6] ss:$0 sm:$0xff] }
  0x18   :  { %678 = vmatprep.subr.bf16.mxu1 %v723_v22  ;;  %696 = vmatprep.subr.bf16.mxu0 %v728_v27  ;;  %v618_v18 = vld [vmem:[%s939_s7] ss:$0 sm:$0xff] }
  0x19   :  { %v619_v21 = vld [vmem:[%s940_s8] ss:$0 sm:$0xff]  ;;  %s759_s8 = smov [#allocation2]  }
  0x1a   :  { %s594_s9 = sshll.u32 %s759_s8, 4  ;;  %s595_s9 = int_to_ptr.vmem [resolvable:$true] %s594_s9 }
  0x1b   :  { %679 = vmatpush3.bf16.msra.mxu1 %v723_v22  ;;  %697 = vmatpush3.bf16.msra.mxu0 %v728_v27  ;;  %p739_p1 = scmp.lt.s32.totalorder %s595_s9, %s595_s9 }
  0x1c   :  { %680 = vmatprep.subr.bf16.mxu1 %v724_v23  ;;  %698 = vmatprep.subr.bf16.mxu0 %v729_v28 }
  0x1f   :  { %681 = vmatpush3.bf16.msra.mxu1 %v724_v23  ;;  %699 = vmatpush3.bf16.msra.mxu0 %v729_v28 }
  0x20   :  { %682 = vmatprep.subr.bf16.mxu1 %v725_v24  ;;  %700 = vmatprep.subr.bf16.mxu0 %v730_v29 }
  0x23   :  { %683 = vmatpush3.bf16.msra.mxu1 %v725_v24  ;;  %701 = vmatpush3.bf16.msra.mxu0 %v730_v29 }
  0x24   :  { %702 = vmatprep.subr.bf16.mxu0 %v731_v13 }
  0x27   :  { %703 = vmatpush3.bf16.msra.mxu0 %v731_v13 }
  0x28   :  { %704 = vmatprep.subr.bf16.mxu0 %v732_v14 }
  0x2b   :  { %705 = vmatpush3.bf16.msra.mxu0 %v732_v14 }
  0x2c   :  { %706 = vmatprep.subr.bf16.mxu0 %v733_v15 }
  0x2f   :  { %707 = vmatpush3.bf16.msra.mxu0 %v733_v15 }
  0xdc   :  { %v662_v31 = vpop.f32.mrb[0].mxu0 }
  0xdd   :  { %v123_v33 = vadd.f32 %v662_v31, %v602_v30  ;;  %v114_v34 = vpop.f32.mrb[1].mxu0 }
  0xde   :  { %v115_v36 = vadd.f32 %v602_v30, %v114_v34  ;;  %v663_v37 = vpop.f32.mrb[2].mxu0 }
  0xdf   :  { %v154_v38 = vsub.f32 %v123_v33, %v607_v32  ;;  %v126_v39 = vadd.f32 %v663_v37, %v602_v30  ;;  %v117_v40 = vpop.f32.mrb[3].mxu0 }
  0xe0   :  { %v152_v41 = vsub.f32 %v115_v36, %v607_v32  ;;  %v118_v42 = vadd.f32 %v602_v30, %v117_v40 }
  0xe1   :  { %v169_v43 = vmul.f32 %v608_v35, %v154_v38  ;;  %v155_v44 = vsub.f32 %v126_v39, %v607_v32 }
  0xe2   :  { %v153_v45 = vsub.f32 %v118_v42, %v607_v32  ;;  %v167_v46 = vmul.f32 %v608_v35, %v152_v41 }
  0xe3   :  { %v170_v47 = vmul.f32 %v608_v35, %v155_v44  ;;  %v177_v50 = vmax.f32 %v169_v43, 0.0 }
  0xe4   :  { %v666_v48 = vpop.f32.mrb[4].mxu0  ;;  %v168_v49 = vmul.f32 %v608_v35, %v153_v45  ;;  %v175_v56 = vmax.f32 %v167_v46, 0.0 }
  0xe5   :  { %v178_v51 = vmax.f32 %v170_v47, 0.0  ;;  %v139_v52 = vadd.f32 %v666_v48, %v602_v30  ;;  %v130_v53 = vpop.f32.mrb[5].mxu0 }
  0xe6   :  { %v131_v54 = vadd.f32 %v602_v30, %v130_v53  ;;  %v667_v55 = vpop.f32.mrb[6].mxu0  ;;  %v176_v57 = vmax.f32 %v168_v49, 0.0 }
  0xe7   :  { %v158_v58 = vsub.f32 %v139_v52, %v607_v32  ;;  %v142_v59 = vadd.f32 %v667_v55, %v602_v30  ;;  %v133_v60 = vpop.f32.mrb[7].mxu0  ;;  %v184_v61 = vpack.c.bf16 %v178_v51, %v177_v50 }
  0xe8   :  { %v156_v62 = vsub.f32 %v131_v54, %v607_v32  ;;  %v134_v63 = vadd.f32 %v602_v30, %v133_v60  ;;  %v183_v0 = vpack.c.bf16 %v176_v57, %v175_v56 }
  0xe9   :  { %v173_v1 = vmul.f32 %v608_v35, %v158_v58  ;;  %v159_v2 = vsub.f32 %v142_v59, %v607_v32 }
  0xea   :  { %v171_v3 = vmul.f32 %v608_v35, %v156_v62  ;;  %v157_v4 = vsub.f32 %v134_v63, %v607_v32  ;;  %684 = vmatprep.mubr.bf16.mxu1 %v183_v0 }
  0xeb   :  { %v174_v5 = vmul.f32 %v608_v35, %v159_v2  ;;  %685 = vmatmul.mubr.bf16.vlgmr.msra.gmra.mrb[0].mxu1 %v184_v61  ;;  %v181_v7 = vmax.f32 %v173_v1, 0.0 }
  0xec   :  { %v172_v6 = vmul.f32 %v608_v35, %v157_v4  ;;  %v179_v9 = vmax.f32 %v171_v3, 0.0 }
  0xed   :  { %v182_v8 = vmax.f32 %v174_v5, 0.0 }
  0xee   :  { %v180_v10 = vmax.f32 %v172_v6, 0.0 }
  0xef   :  { %v186_v11 = vpack.c.bf16 %v182_v8, %v181_v7 }
  0xf0   :  { %v185_v12 = vpack.c.bf16 %v180_v10, %v179_v9 }
  0xf2   :  { %688 = vmatprep.mubr.bf16.mxu1 %v185_v12 }
  0xf3   :  { %689 = vmatmul.mubr.bf16.gmra.mrb[4].mxu1 %v186_v11 }
 0x1be   :  { %v686_v17 = vpop.f32.mrb[0].mxu1 }
 0x1bf   :  { %v301_v19 = vadd.f32 %v686_v17, %v609_v16  ;;  %v292_v20 = vpop.f32.mrb[1].mxu1 }
 0x1c0   :  { %v293_v22 = vadd.f32 %v609_v16, %v292_v20  ;;  %v687_v23 = vpop.f32.mrb[2].mxu1 }
 0x1c1   :  { %v332_v24 = vsub.f32 %v301_v19, %v618_v18  ;;  %v304_v25 = vadd.f32 %v687_v23, %v609_v16  ;;  %v295_v26 = vpop.f32.mrb[3].mxu1 }
 0x1c2   :  { %v330_v27 = vsub.f32 %v293_v22, %v618_v18  ;;  %v296_v28 = vadd.f32 %v609_v16, %v295_v26 }
 0x1c3   :  { %v347_v29 = vmul.f32 %v619_v21, %v332_v24  ;;  %v333_v30 = vsub.f32 %v304_v25, %v618_v18 }
 0x1c4   :  { %v345_v31 = vmul.f32 %v619_v21, %v330_v27  ;;  %v331_v32 = vsub.f32 %v296_v28, %v618_v18 }
 0x1c5   :  { %v348_v33 = vmul.f32 %v619_v21, %v333_v30  ;;  %v355_v36 = vmax.f32 %v347_v29, 0.0 }
 0x1c6   :  { %v346_v34 = vmul.f32 %v619_v21, %v331_v32  ;;  %v690_v35 = vpop.f32.mrb[4].mxu1  ;;  %v353_v40 = vmax.f32 %v345_v31, 0.0  ;;  %v628_v31 = vld [vmem:[%s942_s10] ss:$0 sm:$0xff]  ;;  %s734_s10 = scalar_lea.vmem %s595_s9, 128 }
 0x1c7   :  { %v356_v37 = vmax.f32 %v348_v33, 0.0  ;;  %v317_v38 = vadd.f32 %v690_v35, %v609_v16  ;;  %v308_v39 = vpop.f32.mrb[5].mxu1  ;;  %p735_p0 = scmp.ne.s32.totalorder %s595_s9, %s734_s10  ;;  %p740_p2 = scmp.lt.s32.totalorder %s734_s10, %s734_s10 }
 0x1c8   :  { %v354_v41 = vmax.f32 %v346_v34, 0.0  ;;  %v309_v42 = vadd.f32 %v609_v16, %v308_v39  ;;  %v691_v43 = vpop.f32.mrb[6].mxu1 }
 0x1c9   :  { %v362_v44 = vpack.c.bf16 %v356_v37, %v355_v36  ;;  %v336_v45 = vsub.f32 %v317_v38, %v618_v18  ;;  %v320_v46 = vadd.f32 %v691_v43, %v609_v16  ;;  %v311_v47 = vpop.f32.mrb[7].mxu1  ;;  %p741_p3 = por %p740_p2, %p739_p1 }
 0x1ca   :  { %v334_v48 = vsub.f32 %v309_v42, %v618_v18  ;;  %v312_v49 = vadd.f32 %v609_v16, %v311_v47  ;;  %v361_v50 = vpack.c.bf16 %v354_v41, %v353_v40 }
 0x1cb   :  { %v351_v51 = vmul.f32 %v619_v21, %v336_v45  ;;  %v337_v52 = vsub.f32 %v320_v46, %v618_v18  ;;  %p742_p4 = pnand %p741_p3, %p735_p0 }
 0x1cc   :  { %v349_v53 = vmul.f32 %v619_v21, %v334_v48  ;;  %v335_v54 = vsub.f32 %v312_v49, %v618_v18  ;;  %708 = vmatprep.mubr.bf16.mxu0 %v361_v50 }
 0x1cd   :  { %v352_v55 = vmul.f32 %v619_v21, %v337_v52  ;;  %709 = vmatmul.mubr.bf16.vlgmr.msra.gmra.mrb[8].mxu0 %v362_v44  ;;  %v359_v57 = vmax.f32 %v351_v51, 0.0 }
 0x1ce   :  { %v350_v56 = vmul.f32 %v619_v21, %v335_v54  ;;  %v357_v59 = vmax.f32 %v349_v53, 0.0 }
 0x1cf   :  { %v360_v58 = vmax.f32 %v352_v55, 0.0 }
 0x1d0   :  { %v358_v60 = vmax.f32 %v350_v56, 0.0 }
 0x1d1   :  { %v364_v61 = vpack.c.bf16 %v360_v58, %v359_v57 }
 0x1d2   :  { %v363_v62 = vpack.c.bf16 %v358_v60, %v357_v59 }
 0x1d4   :  { %712 = vmatprep.mubr.bf16.mxu0 %v363_v62 }
 0x1d5   :  { %713 = vmatmul.mubr.bf16.gmra.mrb[12].mxu0 %v364_v61 }
 0x2a0   :  { %v710_v63 = vpop.f32.mrb[8].mxu0 }
 0x2a1   :  { %v506_v0 = vrot.slane %v710_v63, 4  ;;  %v463_v1 = vpop.f32.mrb[9].mxu0 }
 0x2a2   :  { %v494_v2 = vrot.slane %v463_v1, 4  ;;  %v711_v3 = vpop.f32.mrb[10].mxu0 }
 0x2a3   :  { %v507_v4 = vmax.f32 %v710_v63, %v506_v0  ;;  %v512_v5 = vrot.slane %v711_v3, 4  ;;  %v466_v6 = vpop.f32.mrb[11].mxu0 }
 0x2a4   :  { %v495_v7 = vmax.f32 %v463_v1, %v494_v2  ;;  %v500_v8 = vrot.slane %v466_v6, 4 }
 0x2a5   :  { %v508_v9 = vrot.slane %v507_v4, 2  ;;  %v513_v10 = vmax.f32 %v711_v3, %v512_v5 }
 0x2a6   :  { %v496_v11 = vrot.slane %v495_v7, 2  ;;  %v501_v12 = vmax.f32 %v466_v6, %v500_v8 }
 0x2a7   :  { %v509_v13 = vmax.f32 %v507_v4, %v508_v9  ;;  %v514_v14 = vrot.slane %v513_v10, 2 }
 0x2a8   :  { %v497_v15 = vmax.f32 %v495_v7, %v496_v11  ;;  %v502_v16 = vrot.slane %v501_v12, 2  ;;  %v714_v17 = vpop.f32.mrb[12].mxu0 }
 0x2a9   :  { %v510_v18 = vrot.slane %v509_v13, 1  ;;  %v515_v19 = vmax.f32 %v513_v10, %v514_v14  ;;  %v530_v20 = vrot.slane %v714_v17, 4  ;;  %v479_v21 = vpop.f32.mrb[13].mxu0 }
 0x2aa   :  { %v498_v22 = vrot.slane %v497_v15, 1  ;;  %v503_v23 = vmax.f32 %v501_v12, %v502_v16  ;;  %v518_v24 = vrot.slane %v479_v21, 4  ;;  %v715_v25 = vpop.f32.mrb[14].mxu0 }
 0x2ab   :  { %v511_v26 = vmax.f32 %v509_v13, %v510_v18  ;;  %v516_v27 = vrot.slane %v515_v19, 1  ;;  %v531_v28 = vmax.f32 %v714_v17, %v530_v20  ;;  %v536_v29 = vrot.slane %v715_v25, 4  ;;  %v482_v30 = vpop.f32.mrb[15].mxu0 }
 0x2ac   :  { %v504_v32 = vrot.slane %v503_v23, 1  ;;  %v519_v33 = vmax.f32 %v479_v21, %v518_v24  ;;  %v524_v34 = vrot.slane %v482_v30, 4  ;;  %v499_v38 = vmax.f32 %v497_v15, %v498_v22 }
 0x2ad   :  { %v517_v35 = vmax.f32 %v515_v19, %v516_v27  ;;  %v532_v36 = vrot.slane %v531_v28, 2  ;;  %v537_v37 = vmax.f32 %v715_v25, %v536_v29  ;;  %v551_v42 = vadd.f32 %v628_v31, %v511_v26 }
 0x2ae   :  { %v505_v39 = vmax.f32 %v503_v23, %v504_v32  ;;  %v520_v40 = vrot.slane %v519_v33, 2  ;;  %v525_v41 = vmax.f32 %v482_v30, %v524_v34  ;;  %v549_v51 = vadd.f32 %v628_v31, %v499_v38 }
 0x2af   :  { %v533_v43 = vmax.f32 %v531_v28, %v532_v36  ;;  %v538_v44 = vrot.slane %v537_v37, 2  ;;  %v552_v45 = vadd.f32 %v628_v31, %v517_v35  ;;  %v568_v55 = vrot.slane %v551_v42, 6 }
 0x2b0   :  { %v550_v46 = vadd.f32 %v628_v31, %v505_v39  ;;  %v521_v47 = vmax.f32 %v519_v33, %v520_v40  ;;  %v526_v48 = vrot.slane %v525_v41, 2 }
 0x2b1   :  { %v534_v49 = vrot.slane %v533_v43, 1  ;;  %v539_v50 = vmax.f32 %v537_v37, %v538_v44  ;;  %v571_v58 = vrot.slane %v552_v45, 5 }
 0x2b2   :  { %v565_v52 = vrot.slane %v550_v46, 7  ;;  %v522_v53 = vrot.slane %v521_v47, 1  ;;  %v527_v54 = vmax.f32 %v525_v41, %v526_v48 }
 0x2b3   :  { %v535_v56 = vmax.f32 %v533_v43, %v534_v49  ;;  %v540_v57 = vrot.slane %v539_v50, 1 }
 0x2b4   :  { %v567_v59 = vsel %vm566_vm3, %v565_v52, %v549_v51  ;;  %v523_v60 = vmax.f32 %v521_v47, %v522_v53  ;;  %v528_v61 = vrot.slane %v527_v54, 1 }
 0x2b5   :  { %v541_v62 = vmax.f32 %v539_v50, %v540_v57  ;;  %v570_v63 = vsel %vm569_vm4, %v568_v55, %v567_v59  ;;  %v555_v3 = vadd.f32 %v628_v31, %v535_v56 }
 0x2b6   :  { %v553_v0 = vadd.f32 %v628_v31, %v523_v60  ;;  %v529_v1 = vmax.f32 %v527_v54, %v528_v61  ;;  %v573_v2 = vsel %vm572_vm5, %v571_v58, %v570_v63 }
 0x2b7   :  { %v556_v6 = vadd.f32 %v628_v31, %v541_v62  ;;  %v580_v9 = vrot.slane %v555_v3, 2 }
 0x2b8   :  { %v574_v4 = vrot.slane %v553_v0, 4  ;;  %v554_v5 = vadd.f32 %v628_v31, %v529_v1 }
 0x2b9   :  { %v583_v11 = vrot.slane %v556_v6, 1 }
 0x2ba   :  { %v577_v7 = vrot.slane %v554_v5, 3  ;;  %v576_v8 = vsel %vm575_vm6, %v574_v4, %v573_v2 }
 0x2bc   :  { %v579_v10 = vsel %vm578_vm7, %v577_v7, %v576_v8 }
 0x2bd   :  { %v582_v12 = vsel %vm581_vm8, %v580_v9, %v579_v10 }
 0x2be   :  { %v585_v13 = vsel %vm584_vm9, %v583_v11, %v582_v12 }
 0x2bf   :  { %587 = vst [vmem:[#allocation2] sm:$0xff] %v585_v13 }
 0x2c0   :  { %745 = shalt.err (!%p742_p4)
}
 0x2c1   :  { %s746_s15 = scalar_lea.hbm %s943_s11, 128 }
 0x2c2   :  { %p747_p5 = scmp.ne.s32.totalorder %s943_s11, %s746_s15  ;;  %p750_p6 = scmp.lt.u32.totalorder %s746_s15, %s943_s11 }
 0x2c4   :  { %p752_p7 = pnand %p750_p6, %p747_p5 }
 0x2c6   :  { %755 = shalt.err (!%p752_p7)
}
 0x2c7   :  { %597 = dma.vmem_to_hbm [thread:$0]  %s595_s9, 128, %s943_s11, [#allocation3]  }
 0x2c8   :  { %756 = dma.done.wait [#allocation3], 128  }
 0x2c9   :  { %757 = vsyncadd [#allocation3], 4294967168 }
 0x2ca   :  { %601 = vsyncpa [#allocation3], 1 }

</bundles_post_ra>
